<compile_context>
chip_gen: v7x
topology: tpu7x:2x2x1
jax: 0.10.0
libtpu: 0.0.40
codegen_flags: <defaults>
</compile_context>

<pallas_src>
import functools
import math
from collections import namedtuple

import jax
import jax.numpy as jnp
from jax import lax
from jax.experimental import pallas as pl
from jax.experimental.pallas import tpu as pltpu

NEG_SLOPE = 0.01          # torch.nn.LeakyReLU() default negative_slope
_LANE = 128               # TPU lane width
_MAX_BATCH_BLOCK = 256    # batch rows per grid step (multiple of 8)

FFNetParams = namedtuple("FFNetParams", ["weights", "out_dim"])


def _leaky_relu(x):
    # Exact LeakyReLU for 0 < slope < 1; one VALU op instead of compare+select.
    return jnp.maximum(x, NEG_SLOPE * x)


def _nbytes(shape, dtype):
    return math.prod(shape) * jnp.dtype(dtype).itemsize


def _ffnet_kernel(n_layers, compute_energy, mxu_dtype, *refs):
    """refs = (x_ref, w0_ref, ..., w{n-1}_ref, out_ref[, energy_ref]).

    Weights arrive in canonical (in_dim, out_dim) = (K, N) layout (prepared
    once off the hot path); the last weight's N is pre-padded to a 128-lane
    multiple so the final store is lane-dense and unmasked.
    """
    x_ref = refs[0]
    w_refs = refs[1:1 + n_layers]
    out_ref = refs[1 + n_layers]
    e_ref = refs[2 + n_layers] if compute_energy else None

    h = x_ref[...].astype(jnp.float32)

    if compute_energy:
        e_slab = jnp.zeros(e_ref.shape, jnp.float32)
        lane = lax.broadcasted_iota(jnp.int32, e_ref.shape, 1)

    for i, w_ref in enumerate(w_refs):
        # Linear (no bias) on the MXU, canonical (K, N) orientation, f32 acc.
        # Operands optionally cast to bf16 (weights already stored that way);
        # all non-matmul math stays in f32 (v5e VPU/EUP have no bf16).
        h = lax.dot_general(
            h.astype(mxu_dtype), w_ref[...],
            dimension_numbers=(((1,), (0,)), ((), ())),
            preferred_element_type=jnp.float32)
        h = _leaky_relu(h)
        if compute_energy:
            # per-layer energy (x ** 2).sum(dim=-1) -> (block_b, 1) placed
            # into lane i of the lane-dense slab (single unmasked store later).
            e = jnp.sum(h * h, axis=-1, keepdims=True)
            e_slab = jnp.where(lane == i, e, e_slab)

    out_ref[...] = h.astype(out_ref.dtype)   # (block_b, 128*k): unmasked vst
    if compute_energy:
        e_ref[...] = e_slab


@functools.partial(jax.jit, static_argnames=("out_dim", "return_energy"))
def _ffnet_forward_jit(x, weights, *, out_dim, return_energy):
    n_layers = len(weights)
    batch, feat = x.shape
    out_pad = weights[-1].shape[1]            # already a 128-lane multiple

    # Batch grid: one "parallel" axis so megacore/v7x shards it and large
    # (stacked) batches are pipelined instead of paying one call per sample.
    block_b = batch if batch <= _MAX_BATCH_BLOCK else _MAX_BATCH_BLOCK
    grid = (pl.cdiv(batch, block_b),)

    mxu_dtype = weights[0].dtype
    kernel = functools.partial(_ffnet_kernel, n_layers, return_energy, mxu_dtype)

    in_specs = [pl.BlockSpec((block_b, feat), lambda b: (b, 0))]
    # Constant index map -> weights are fetched once, not per grid step.
    in_specs += [pl.BlockSpec(w.shape, lambda b: (0, 0)) for w in weights]
    out_spec = pl.BlockSpec((block_b, out_pad), lambda b: (b, 0))

    # Explicit VMEM budget (double-buffered blocks + resident weights), clamped
    # to sane bounds across v5e (16 MiB default scoped) / v6e / v7x (64 MiB).
    needed = 2 * _nbytes((block_b, feat), x.dtype)
    needed += 2 * _nbytes((block_b, out_pad), jnp.float32)
    needed += sum(2 * _nbytes(w.shape, w.dtype) for w in weights)
    if return_energy:
        needed += 2 * _nbytes((block_b, _LANE), jnp.float32)
    vmem_limit = int(min(max(needed + (4 << 20), 16 << 20), 64 << 20))

    cparams = pltpu.CompilerParams(
        dimension_semantics=("parallel",),
        vmem_limit_bytes=vmem_limit)

    if return_energy:
        out, e_slab = pl.pallas_call(
            kernel,
            grid=grid,
            out_shape=(
                jax.ShapeDtypeStruct((batch, out_pad), jnp.float32),
                jax.ShapeDtypeStruct((batch, _LANE), jnp.float32),
            ),
            in_specs=in_specs,
            out_specs=(out_spec, pl.BlockSpec((block_b, _LANE), lambda b: (b, 0))),
            compiler_params=cparams,
        )(x, *weights)
        return out[:, :out_dim], e_slab[:, :n_layers]

    out = pl.pallas_call(
        kernel,
        grid=grid,
        out_shape=jax.ShapeDtypeStruct((batch, out_pad), jnp.float32),
        in_specs=in_specs,
        out_specs=out_spec,
        compiler_params=cparams,
    )(x, *weights)
    return out[:, :out_dim]


def prepare_ffnet_params(torch_layout_weights, mxu_dtype=jnp.float32):
    """One-time conversion (off the hot path) of PyTorch (out_dim, in_dim)
    Linear weights to canonical MXU (in_dim, out_dim) layout.  The last
    layer's output dim is zero-padded to a 128-lane multiple so the kernel's
    main output store is lane-dense.  Set mxu_dtype=jnp.bfloat16 on v6e/v7x
    for full MXU throughput at scaled sizes (results then deviate from the
    f32 torch reference beyond ~1e-5)."""
    n = len(torch_layout_weights)
    ws = []
    out_dim = None
    for i, w in enumerate(torch_layout_weights):
        w = jnp.asarray(w, jnp.float32).T          # (in_dim, out_dim)
        if i == n - 1:
            out_dim = int(w.shape[1])
            pad = (-w.shape[1]) % _LANE
            if pad:
                w = jnp.pad(w, ((0, 0), (0, pad)))  # zero cols: inert
        ws.append(w.astype(mxu_dtype))
    return FFNetParams(weights=tuple(ws), out_dim=out_dim)


def ffnet_forward(x, params, return_energy=False):
    """Forward pass of FFNet.

    params: FFNetParams from prepare_ffnet_params(torch_weights).
    Returns `out` (f32) or `(out, energies)` where energies is a
    (B, n_layers) f32 array; column i equals the module's per-layer energy
    `(x ** 2).sum(dim=-1)` after layer i.

    Perf note: stack the forward-forward workload's many tiny evaluations
    (pos/neg samples, per-label goodness) along the batch axis before calling;
    the kernel tiles the batch over a parallel grid.
    """
    return _ffnet_forward_jit(x, params.weights, out_dim=params.out_dim,
                              return_energy=bool(return_energy))


def _ffnet_ref(x, torch_layout_weights):
    """Plain-JAX reference mirroring the PyTorch forward."""
    h = x
    energies = []
    for w in torch_layout_weights:
        z = h @ w.T
        h = jnp.maximum(z, NEG_SLOPE * z)
        energies.append(jnp.sum(h * h, axis=-1))
    return h, energies


def _init_ffnet_weights(key, in_dim, n_layers=3, dim_mult=1, out_dim=None,
                        n_labels=10):
    """Deterministic init matching FFNet.__init__ layer shapes (torch layout).

    Layer 0: (in_dim + n_labels) -> int(in_dim * dim_mult)
    Middle : prev -> int(in_dim * dim_mult)
    Last   : prev -> out_dim (defaults to in_dim)
    U(-1/sqrt(fan_in), 1/sqrt(fan_in)), bias=False.
    """
    if out_dim is None:
        out_dim = in_dim
    if isinstance(dim_mult, (int, float)):
        dim_mult = [dim_mult] * (n_layers - 1)

    shapes = []
    dim = int(in_dim * dim_mult[0])
    shapes.append((dim, in_dim + n_labels))
    prev = dim
    for i in range(n_layers - 2):
        dim = int(in_dim * dim_mult[i + 1])
        shapes.append((dim, prev))
        prev = dim
    shapes.append((out_dim, prev))

    weights = []
    for shape in shapes:
        key, sub = jax.random.split(key)
        bound = 1.0 / (shape[1] ** 0.5)
        weights.append(
            jax.random.uniform(sub, shape, jnp.float32, -bound, bound))
    return weights


if __name__ == "__main__":
    # Small deterministic setup: in_dim=22, n_labels=10 -> first layer sees 32
    # features; 3 layers of Linear(bias=False)+LeakyReLU; out_dim=in_dim=22.
    batch, in_dim, n_labels, n_layers = 8, 22, 10, 3

    key = jax.random.PRNGKey(0)
    key, wkey, xkey, xkey2 = jax.random.split(key, 4)
    raw_weights = _init_ffnet_weights(wkey, in_dim, n_layers=n_layers,
                                      n_labels=n_labels)
    params = prepare_ffnet_params(raw_weights)   # one-time layout conversion

    # forward() expects label one-hot already concatenated -> F = in_dim+n_labels
    x = jax.random.normal(xkey, (batch, in_dim + n_labels), jnp.float32)

    # return_energy=True path
    out, energies = ffnet_forward(x, params, return_energy=True)
    out = jax.block_until_ready(out)
    energies = jax.block_until_ready(energies)

    # return_energy=False path (no-energy kernel variant)
    out_only = jax.block_until_ready(ffnet_forward(x, params))

    ref_out, ref_energies = _ffnet_ref(x, raw_weights)
    assert out.shape == (batch, in_dim)
    assert jnp.allclose(out, ref_out, atol=1e-5, rtol=1e-5)
    assert jnp.allclose(out_only, ref_out, atol=1e-5, rtol=1e-5)
    assert energies.shape == (batch, n_layers)
    for i, er in enumerate(ref_energies):
        assert jnp.allclose(energies[:, i], er, atol=1e-4, rtol=1e-5)

    # Larger stacked batch (e.g. validate() stacks n_labels copies): exercises
    # the multi-step parallel batch grid incl. a partial last block.
    big_b = 300
    xb = jax.random.normal(xkey2, (big_b, in_dim + n_labels), jnp.float32)
    out_b, e_b = ffnet_forward(xb, params, return_energy=True)
    out_b = jax.block_until_ready(out_b)
    e_b = jax.block_until_ready(e_b)
    ref_out_b, ref_e_b = _ffnet_ref(xb, raw_weights)
    assert out_b.shape == (big_b, in_dim)
    assert jnp.allclose(out_b, ref_out_b, atol=1e-5, rtol=1e-5)
    assert jnp.allclose(e_b, jnp.stack(ref_e_b, axis=-1), atol=1e-4, rtol=1e-5)

    print("KERNEL_OK")
</pallas_src>

<mosaic_0001>
module attributes {stable_mosaic.version = 11 : i64} {
  func.func @_ffnet_kernel(%arg0: i32, %arg1: memref<8x32xf32, #tpu.memory_space<vmem>>, %arg2: memref<32x22xf32, #tpu.memory_space<vmem>>, %arg3: memref<22x22xf32, #tpu.memory_space<vmem>>, %arg4: memref<22x128xf32, #tpu.memory_space<vmem>>, %arg5: memref<8x128xf32, #tpu.memory_space<vmem>>, %arg6: memref<8x128xf32, #tpu.memory_space<vmem>>) attributes {dimension_semantics = [#tpu.dimension_semantics<parallel>], iteration_bounds = array<i64: 1>, scalar_prefetch = 0 : i64, scratch_operands = 0 : i64, tpu.core_type = #tpu.core_type<tc>, window_params = [{transform_indices = @transform_0, window_bounds = array<i64: 8, 32>}, {pipeline_mode = #tpu.pipeline_mode<synchronous>, transform_indices = @transform_1, window_bounds = array<i64: 32, 22>}, {pipeline_mode = #tpu.pipeline_mode<synchronous>, transform_indices = @transform_2, window_bounds = array<i64: 22, 22>}, {pipeline_mode = #tpu.pipeline_mode<synchronous>, transform_indices = @transform_3, window_bounds = array<i64: 22, 128>}, {transform_indices = @transform_4, window_bounds = array<i64: 8, 128>}, {transform_indices = @transform_5, window_bounds = array<i64: 8, 128>}]} {
    %c0 = arith.constant 0 : index
    %c0_0 = arith.constant 0 : index
    %0 = vector.load %arg1[%c0, %c0_0] : memref<8x32xf32, #tpu.memory_space<vmem>>, vector<8x32xf32>
    %cst = arith.constant 0.000000e+00 : f32
    %1 = vector.broadcast %cst : f32 to vector<8x128xf32>
    %2 = tpu.iota {dimensions = array<i32: 1>} : vector<8x128xi32>
    %c0_1 = arith.constant 0 : index
    %c0_2 = arith.constant 0 : index
    %3 = vector.load %arg2[%c0_1, %c0_2] : memref<32x22xf32, #tpu.memory_space<vmem>>, vector<32x22xf32>
    %cst_3 = arith.constant dense<0.000000e+00> : vector<8x22xf32>
    %4 = tpu.matmul %0, %3, %cst_3 {dimension_numbers = #tpu.dot_dimension_numbers<[1], [0], [0], [1], [0, 0, 1, 1], [], []>} : vector<8x32xf32>, vector<32x22xf32>, vector<8x22xf32> -> vector<8x22xf32>
    %cst_4 = arith.constant 0.00999999977 : f32
    %5 = vector.broadcast %cst_4 : f32 to vector<8x22xf32>
    %6 = arith.mulf %5, %4 : vector<8x22xf32>
    %7 = arith.maximumf %4, %6 : vector<8x22xf32>
    %8 = arith.mulf %7, %7 : vector<8x22xf32>
    %cst_5 = arith.constant dense<0.000000e+00> : vector<8xf32>
    %9 = vector.multi_reduction <add>, %8, %cst_5 [1] : vector<8x22xf32> to vector<8xf32>
    %10 = vector.shape_cast %9 : vector<8xf32> to vector<8x1xf32>
    %c0_i32 = arith.constant 0 : i32
    %11 = vector.broadcast %c0_i32 : i32 to vector<8x128xi32>
    %12 = arith.cmpi eq, %2, %11 : vector<8x128xi32>
    %13 = vector.shape_cast %10 : vector<8x1xf32> to vector<8x1xf32>
    %14 = vector.broadcast %13 : vector<8x1xf32> to vector<8x128xf32>
    %15 = arith.select %12, %14, %1 : vector<8x128xi1>, vector<8x128xf32>
    %c0_6 = arith.constant 0 : index
    %c0_7 = arith.constant 0 : index
    %16 = vector.load %arg3[%c0_6, %c0_7] : memref<22x22xf32, #tpu.memory_space<vmem>>, vector<22x22xf32>
    %cst_8 = arith.constant dense<0.000000e+00> : vector<8x22xf32>
    %17 = tpu.matmul %7, %16, %cst_8 {dimension_numbers = #tpu.dot_dimension_numbers<[1], [0], [0], [1], [0, 0, 1, 1], [], []>} : vector<8x22xf32>, vector<22x22xf32>, vector<8x22xf32> -> vector<8x22xf32>
    %cst_9 = arith.constant 0.00999999977 : f32
    %18 = vector.broadcast %cst_9 : f32 to vector<8x22xf32>
    %19 = arith.mulf %18, %17 : vector<8x22xf32>
    %20 = arith.maximumf %17, %19 : vector<8x22xf32>
    %21 = arith.mulf %20, %20 : vector<8x22xf32>
    %cst_10 = arith.constant dense<0.000000e+00> : vector<8xf32>
    %22 = vector.multi_reduction <add>, %21, %cst_10 [1] : vector<8x22xf32> to vector<8xf32>
    %23 = vector.shape_cast %22 : vector<8xf32> to vector<8x1xf32>
    %c1_i32 = arith.constant 1 : i32
    %24 = vector.broadcast %c1_i32 : i32 to vector<8x128xi32>
    %25 = arith.cmpi eq, %2, %24 : vector<8x128xi32>
    %26 = vector.shape_cast %23 : vector<8x1xf32> to vector<8x1xf32>
    %27 = vector.broadcast %26 : vector<8x1xf32> to vector<8x128xf32>
    %28 = arith.select %25, %27, %15 : vector<8x128xi1>, vector<8x128xf32>
    %c0_11 = arith.constant 0 : index
    %c0_12 = arith.constant 0 : index
    %29 = vector.load %arg4[%c0_11, %c0_12] : memref<22x128xf32, #tpu.memory_space<vmem>>, vector<22x128xf32>
    %cst_13 = arith.constant dense<0.000000e+00> : vector<8x128xf32>
    %30 = tpu.matmul %20, %29, %cst_13 {dimension_numbers = #tpu.dot_dimension_numbers<[1], [0], [0], [1], [0, 0, 1, 1], [], []>} : vector<8x22xf32>, vector<22x128xf32>, vector<8x128xf32> -> vector<8x128xf32>
    %cst_14 = arith.constant 0.00999999977 : f32
    %31 = vector.broadcast %cst_14 : f32 to vector<8x128xf32>
    %32 = arith.mulf %31, %30 : vector<8x128xf32>
    %33 = arith.maximumf %30, %32 : vector<8x128xf32>
    %34 = arith.mulf %33, %33 : vector<8x128xf32>
    %cst_15 = arith.constant dense<0.000000e+00> : vector<8xf32>
    %35 = vector.multi_reduction <add>, %34, %cst_15 [1] : vector<8x128xf32> to vector<8xf32>
    %36 = vector.shape_cast %35 : vector<8xf32> to vector<8x1xf32>
    %c2_i32 = arith.constant 2 : i32
    %37 = vector.broadcast %c2_i32 : i32 to vector<8x128xi32>
    %38 = arith.cmpi eq, %2, %37 : vector<8x128xi32>
    %39 = vector.shape_cast %36 : vector<8x1xf32> to vector<8x1xf32>
    %40 = vector.broadcast %39 : vector<8x1xf32> to vector<8x128xf32>
    %41 = arith.select %38, %40, %28 : vector<8x128xi1>, vector<8x128xf32>
    %c0_16 = arith.constant 0 : index
    %c0_17 = arith.constant 0 : index
    %42 = vector.load %arg5[%c0_16, %c0_17] : memref<8x128xf32, #tpu.memory_space<vmem>>, vector<8x128xf32>
    tpu.vector_store %arg5[%c0_16, %c0_17], %33 {strides = array<i32>} : memref<8x128xf32, #tpu.memory_space<vmem>>, vector<8x128xf32>,
    %c0_18 = arith.constant 0 : index
    %c0_19 = arith.constant 0 : index
    %43 = vector.load %arg6[%c0_18, %c0_19] : memref<8x128xf32, #tpu.memory_space<vmem>>, vector<8x128xf32>
    tpu.vector_store %arg6[%c0_18, %c0_19], %41 {strides = array<i32>} : memref<8x128xf32, #tpu.memory_space<vmem>>, vector<8x128xf32>,
    return
  }
  func.func @transform_0(%arg0: i32) -> (i32, i32) {
    %c0_i32 = arith.constant 0 : i32
    %c0_i32_0 = arith.constant 0 : i32
    return %arg0, %c0_i32 : i32, i32
  }
  func.func @transform_1(%arg0: i32) -> (i32, i32) {
    %c0_i32 = arith.constant 0 : i32
    %c0_i32_0 = arith.constant 0 : i32
    %c0_i32_1 = arith.constant 0 : i32
    return %c0_i32, %c0_i32_0 : i32, i32
  }
  func.func @transform_2(%arg0: i32) -> (i32, i32) {
    %c0_i32 = arith.constant 0 : i32
    %c0_i32_0 = arith.constant 0 : i32
    %c0_i32_1 = arith.constant 0 : i32
    return %c0_i32, %c0_i32_0 : i32, i32
  }
  func.func @transform_3(%arg0: i32) -> (i32, i32) {
    %c0_i32 = arith.constant 0 : i32
    %c0_i32_0 = arith.constant 0 : i32
    %c0_i32_1 = arith.constant 0 : i32
    return %c0_i32, %c0_i32_0 : i32, i32
  }
  func.func @transform_4(%arg0: i32) -> (i32, i32) {
    %c0_i32 = arith.constant 0 : i32
    %c0_i32_0 = arith.constant 0 : i32
    return %arg0, %c0_i32 : i32, i32
  }
  func.func @transform_5(%arg0: i32) -> (i32, i32) {
    %c0_i32 = arith.constant 0 : i32
    %c0_i32_0 = arith.constant 0 : i32
    return %arg0, %c0_i32 : i32, i32
  }
}

</mosaic_0001>

<bundles_post_ra>
// kernel: _ffnet_forward_jit.1
= control target key start
LH: loop header
LB: loop body
LE: loop exit
PB: predicated region body
PF: predicated region fallthrough
CT: control target
= control target key end

     0   :  { %v391_v3 = vmov 0.0|0.0   ;;  %vm392_vm0 = vmmov 0   ;;  %v393_v6 = vmov 0.0   ;;  %s482_s0 = inlined_call_operand.vmem [shape: f32[8,32], index: 0, kind: input, shape index: {}]   ;;  %s483_s1 = inlined_call_operand.vmem [shape: f32[32,22], index: 1, kind: input, shape index: {}]   ;;  %s484_s2 = inlined_call_operand.vmem [shape: f32[22,22], index: 2, kind: input, shape index: {}]   ;;  %s485_s3 = inlined_call_operand.vmem [shape: f32[22,128], index: 3, kind: input, shape index: {}]   ;;  %s486_s4 = inlined_call_operand.hbm [shape: f32[8,128], index: 4, kind: output, shape index: {0}]   ;;  %s487_s5 = inlined_call_operand.vmem [shape: f32[8,128], index: 5, kind: output, shape index: {1}]  }
   0x1   :  { %v23_v0 = vld [vmem:[%s483_s1] sm:$0xff]  ;;  %v24_v1 = vld [vmem:[%s483_s1 + $0x8] sm:$0xff]  ;;  %v25_v2 = vld [vmem:[%s483_s1 + $0x10] sm:$0xff]  ;;  %351 = vmatprep.subr.bf16.mxu0 %v391_v3  ;;  %330 = vmatprep.mubr.msk.f32.mxu0 %vm392_vm0, %v393_v6 }
   0x2   :  { %v352_v4 = vpack.c.bf16 %v24_v1, %v23_v0  ;;  %v26_v5 = vld [vmem:[%s483_s1 + $0x18] sm:$0xff] }
   0x3   :  { %11 = vsyncpa [#allocation3], 0  ;;  %357 = vmatprep.subr.bf16.mxu1 %v391_v3  ;;  %339 = vmatprep.mubr.msk.f32.mxu1 %vm392_vm0, %v393_v6  ;;  %v355_v7 = vpack.c.bf16 %v26_v5, %v25_v2  ;;  %v20_v8 = vld [vmem:[%s482_s0] sm:$0xff]  ;;  %vm27_vm1 = vcmask 261120   ;;  %v111_v10 = vld [vmem:[%s484_s2 + $0x8] sm:$0xff]  ;;  %vm116_vm2 = vcmask 1045504  }
   0x4   :  { %353 = vmatpush3.bf16.msra.mxu0 %v352_v4  ;;  %v110_v9 = vld [vmem:[%s484_s2] sm:$0xff]  ;;  %v112_v12 = vld [vmem:[%s484_s2 + $0x10] sm:$0x3f]  ;;  %vm104_vm3 = vcmask 179200   ;;  %v199_v20 = vld [vmem:[%s485_s3 + $0x8] sm:$0xff] }
   0x5   :  { %354 = vmatprep.subr.bf16.mxu0 %v391_v3  ;;  %v358_v11 = vpack.c.bf16 %v111_v10, %v110_v9  ;;  %v198_v19 = vld [vmem:[%s485_s3] sm:$0xff]  ;;  %v200_v22 = vld [vmem:[%s485_s3 + $0x10] sm:$0x3f]  ;;  %s394_s3 = smov [#allocation2]  }
   0x6   :  { %v361_v21 = vpack.c.bf16 %v199_v20, %v198_v19  ;;  %s292_s12 = sshll.u32 %s394_s3, 4  ;;  %s293_s12 = int_to_ptr.vmem [resolvable:$true] %s292_s12 }
   0x7   :  { %359 = vmatpush3.bf16.msra.mxu1 %v358_v11  ;;  %s367_s13 = scalar_lea.vmem %s293_s12, 128  ;;  %p372_p1 = scmp.lt.s32.totalorder %s293_s12, %s293_s12 }
   0x8   :  { %356 = vmatpush3.bf16.msra.mxu0 %v355_v7  ;;  %337 = vmatprep.subr.mxu1 %v393_v6  ;;  %p368_p0 = scmp.ne.s32.totalorder %s293_s12, %s367_s13  ;;  %p373_p2 = scmp.lt.s32.totalorder %s367_s13, %s367_s13 }
   0xa   :  { %p374_p3 = por %p373_p2, %p372_p1 }
   0xb   :  { %331 = vmatmul.mubr.msk.f32.vlgmr.msra.gmra.mrb[0].mxu0 %vm27_vm1, %v20_v8  ;;  %338 = vmatpush3.msk.msra.mxu1 %vm116_vm2, %v112_v12 }
   0xc   :  { %360 = vmatprep.subr.bf16.mxu1 %v391_v3  ;;  %p375_p4 = pnand %p374_p3, %p368_p0 }
  0xde   :  { %v97_v13 = vpop.f32.mrb[0].mxu0 }
  0xdf   :  { %v101_v14 = vmul.f32 0.01, %v97_v13  ;;  %v332_v15 = vpop.f32.mrb[1].mxu0 }
  0xe1   :  { %v102_v16 = vmax.f32 %v97_v13, %v101_v14 }
  0xe3   :  { %340 = vmatmul.mubr.msk.f32.vlgmr.msra.gmra.mrb[0].mxu1 %vm104_vm3, %v102_v16  ;;  %v103_v17 = vmul.f32 %v102_v16, %v102_v16 }
  0xe4   :  { %348 = vmatprep.mubr.msk.f32.mxu1 %vm392_vm0, %v393_v6  ;;  %362 = vmatpush3.bf16.msra.mxu1 %v361_v21 }
  0xe5   :  { %v105_v18 = vsel %vm104_vm3, %v103_v17, 0.0  ;;  %346 = vmatprep.subr.mxu1 %v393_v6 }
  0xe6   :  { %106 = vadd.xlane.f32.xlu0 %v105_v18 }
  0xe8   :  { %347 = vmatpush3.msk.msra.mxu1 %vm116_vm2, %v200_v22 }
 0x1b6   :  { %v186_v23 = vpop.f32.mrb[0].mxu1 }
 0x1b7   :  { %v190_v24 = vmul.f32 0.01, %v186_v23  ;;  %v341_v25 = vpop.f32.mrb[1].mxu1 }
 0x1b9   :  { %v191_v26 = vmax.f32 %v186_v23, %v190_v24 }
 0x1bb   :  { %349 = vmatmul.mubr.msk.f32.vlgmr.msra.gmra.mrb[2].mxu1 %vm104_vm3, %v191_v26  ;;  %v192_v27 = vmul.f32 %v191_v26, %v191_v26 }
 0x1bd   :  { %v193_v28 = vsel %vm104_vm3, %v192_v27, 0.0 }
 0x1be   :  { %194 = vadd.xlane.f32.xlu0 %v193_v28 }
 0x28e   :  { %v273_v29 = vpop.f32.mrb[2].mxu1 }
 0x28f   :  { %v277_v30 = vmul.f32 0.01, %v273_v29  ;;  %v350_v31 = vpop.f32.mrb[3].mxu1 }
 0x291   :  { %v278_v32 = vmax.f32 %v273_v29, %v277_v30 }
 0x293   :  { %284 = vst [vmem:[#allocation2] sm:$0xff] %v278_v32  ;;  %v279_v33 = vmul.f32 %v278_v32, %v278_v32 }
 0x295   :  { %280 = vadd.xlane.f32.xlu1 %v279_v33 }
 0x296   :  { %378 = shalt.err (!%p375_p4)
}
 0x297   :  { %s379_s16 = scalar_lea.hbm %s486_s4, 128 }
 0x298   :  { %p380_p5 = scmp.ne.s32.totalorder %s486_s4, %s379_s16  ;;  %p383_p6 = scmp.lt.u32.totalorder %s379_s16, %s486_s4 }
 0x29a   :  { %p385_p7 = pnand %p383_p6, %p380_p5 }
 0x29c   :  { %388 = shalt.err (!%p385_p7)
}
 0x29d   :  { %295 = dma.vmem_to_hbm [thread:$0]  %s293_s12, 128, %s486_s4, [#allocation3]   ;;  %v21_v34 = vlaneseq  ;;  %v107_v36 = vpop.xlane.xlu0 %106 }
 0x29f   :  { %v22_v35 = vand.u32 127, %v21_v34 }
 0x2a1   :  { %vm108_vm4 = vcmp.eq.s32.totalorder %v22_v35, 0  ;;  %vm196_vm5 = vcmp.eq.s32.totalorder %v22_v35, 1  ;;  %v195_v37 = vpop.xlane.xlu0 %194  ;;  %vm282_vm6 = vcmp.eq.s32.totalorder %v22_v35, 2 }
 0x2a2   :  { %v109_v38 = vsel %vm108_vm4, %v107_v36, 0.0 }
 0x2a3   :  { %v197_v39 = vsel %vm196_vm5, %v195_v37, %v109_v38 }
 0x322   :  { %v281_v40 = vpop.xlane.xlu1 %280 }
 0x323   :  { %v283_v41 = vsel %vm282_vm6, %v281_v40, %v197_v39 }
 0x324   :  { %285 = vst [vmem:[%s487_s5] sm:$0xff] %v283_v41 }
 0x325   :  { %389 = dma.done.wait [#allocation3], 128  }
 0x326   :  { %390 = vsyncadd [#allocation3], 4294967168 }
 0x327   :  { %303 = vsyncpa [#allocation3], 1 }

</bundles_post_ra>
